<compile_context>
chip_gen: v7x
topology: tpu7x:2x2x1
jax: 0.10.0
libtpu: 0.0.40
codegen_flags: <defaults>
</compile_context>

<pallas_src>
import jax
import jax.numpy as jnp
from jax.experimental import pallas as pl
from jax.experimental.pallas import tpu as pltpu


# --------------------------------------------------------------------------
# Pallas kernel: one (batch, pixel-tile) block of the fused gated ConvT.
# --------------------------------------------------------------------------
def _gated_convt_kernel(patches_ref, w_ref, bias_ref, o_ref):
    # patches_ref: [K, TM]     bf16  im2col columns (lane axis = output pixels)
    # w_ref:       [2*N, K]    bf16  stacked flipped weights (layer_f ; layer_g)
    # bias_ref:    [2*N, 1]    f32   stacked conv biases
    # o_ref:       [N, TM]     f32   gated output tile (lane-dense)
    n_out = o_ref.shape[0]
    acc = jnp.dot(w_ref[...], patches_ref[...],
                  preferred_element_type=jnp.float32)        # [2N, TM], f32 acc
    acc = acc + bias_ref[...]                                # lane broadcast
    f = acc[:n_out, :]                                       # sublane-aligned split
    g = acc[n_out:, :]
    o_ref[...] = f * jax.nn.sigmoid(g)                       # EUP sigmoid, VPU mul


# --------------------------------------------------------------------------
# Wrapper
# --------------------------------------------------------------------------
def _round_up(a, b):
    return (a + b - 1) // b * b


def _flatten_convt_weight(w):
    """PyTorch ConvTranspose2d weight [Cin, Cout, k, k] -> [Cout, Cin*k*k].

    stride=1 / padding=0 transposed conv == correlation of the (k-1)-zero-padded
    input with the spatially flipped kernel; K is flattened (ci-major, kh, kw)
    to match the im2col ordering in `gated_conv_transpose`.
    """
    wf = jnp.flip(w, axis=(2, 3))
    wf = jnp.transpose(wf, (1, 0, 2, 3))                     # [Cout, Cin, k, k]
    return wf.reshape(wf.shape[0], -1)


def gated_conv_transpose(x, params, *, ksize=3, block_m=2048):
    """x: [B, Cin, H, W] f32 (NCHW).  Returns [B, Cout, H+k-1, W+k-1] f32."""
    assert block_m % 128 == 0, "block_m must be a multiple of 128 (lane width)"
    wf, bf = params["w_f"], params["b_f"]                    # [Cin,Cout,k,k], [Cout]
    wg, bg = params["w_g"], params["b_g"]

    B, Cin, H, W = x.shape
    Cout = wf.shape[1]
    k = ksize
    Ho, Wo = H + k - 1, W + k - 1
    K = Cin * k * k
    Mhw = Ho * Wo                                            # pixels per batch image

    # ---- glue: pad + im2col in the kernel's native [B, K, Ho*Wo] layout.
    # Built so that NO transpose of the (k*k-amplified) patches or of the
    # kernel output is ever needed; cast to bf16 before amplification.
    xp = jnp.pad(x.astype(jnp.bfloat16),
                 ((0, 0), (0, 0), (k - 1, k - 1), (k - 1, k - 1)))
    cols = [xp[:, :, i:i + Ho, j:j + Wo] for i in range(k) for j in range(k)]
    patches = jnp.stack(cols, axis=2)                        # [B, Cin, k*k, Ho, Wo]
    patches = patches.reshape(B, K, Mhw)                     # ci-major, tap, pixel

    # Adaptive lane tile: multiple of 128, no larger than needed.
    tm = max(128, min(block_m, _round_up(Mhw, 128)))
    Mp = _round_up(Mhw, tm)
    if Mp != Mhw:
        patches = jnp.pad(patches, ((0, 0), (0, 0), (0, Mp - Mhw)))

    # Stacked weights/biases: one matmul yields both f and g pre-activations.
    w_stacked = jnp.concatenate(
        [_flatten_convt_weight(wf), _flatten_convt_weight(wg)], axis=0
    ).astype(jnp.bfloat16)                                   # [2*Cout, K]
    bias_stacked = jnp.concatenate([bf, bg]).reshape(2 * Cout, 1).astype(jnp.float32)

    grid = (B, Mp // tm)
    cost = pl.CostEstimate(
        flops=2 * B * Mp * K * (2 * Cout),
        transcendentals=B * Mp * Cout,                       # sigmoid on the gate half
        bytes_accessed=(B * K * Mp * 2) + (B * Cout * Mp * 4)
                       + (2 * Cout * K * 2) + (2 * Cout * 4),
    )

    out = pl.pallas_call(
        _gated_convt_kernel,
        out_shape=jax.ShapeDtypeStruct((B, Cout, Mp), jnp.float32),
        grid=grid,
        in_specs=[
            pl.BlockSpec((None, K, tm), lambda b, i: (b, 0, i)),   # streamed patches
            pl.BlockSpec((2 * Cout, K), lambda b, i: (0, 0)),      # resident weights
            pl.BlockSpec((2 * Cout, 1), lambda b, i: (0, 0)),      # resident biases
        ],
        out_specs=pl.BlockSpec((None, Cout, tm), lambda b, i: (b, 0, i)),
        compiler_params=pltpu.CompilerParams(
            dimension_semantics=("parallel", "parallel"),    # 2x TC on v7x; free elsewhere
            vmem_limit_bytes=32 * 1024 * 1024,
        ),
        cost_estimate=cost,
    )(patches, w_stacked, bias_stacked)

    # ---- glue: crop pixel padding -> pure reshape to NCHW (no transpose).
    out = out[:, :, :Mhw] if Mp != Mhw else out
    return out.reshape(B, Cout, Ho, Wo)


# --------------------------------------------------------------------------
# Pure-JAX reference: direct scatter-add transcription of nn.ConvTranspose2d
# (stride=1, padding=0, groups=1) — independent of the im2col/flip identity
# used by the kernel.
# --------------------------------------------------------------------------
def _conv_transpose_ref(x, w, b):
    B, Cin, H, W = x.shape
    Cout, k = w.shape[1], w.shape[2]
    out = jnp.zeros((B, Cout, H + k - 1, W + k - 1), jnp.float32)
    for p in range(k):
        for q in range(k):
            contrib = jnp.einsum('bchw,cn->bnhw', x, w[:, :, p, q])
            out = out.at[:, :, p:p + H, q:q + W].add(contrib)
    return out + b.reshape(1, -1, 1, 1)


def _reference(x, params):
    f = _conv_transpose_ref(x, params["w_f"], params["b_f"])
    g = jax.nn.sigmoid(_conv_transpose_ref(x, params["w_g"], params["b_g"]))
    return f * g


def make_params(key, in_channels, out_channels, ksize):
    ks = jax.random.split(key, 4)
    bound = 1.0 / jnp.sqrt(in_channels * ksize * ksize)
    shape_w = (in_channels, out_channels, ksize, ksize)      # PyTorch ConvT layout
    return {
        "w_f": jax.random.uniform(ks[0], shape_w, jnp.float32, -bound, bound),
        "b_f": jax.random.uniform(ks[1], (out_channels,), jnp.float32, -bound, bound),
        "w_g": jax.random.uniform(ks[2], shape_w, jnp.float32, -bound, bound),
        "b_g": jax.random.uniform(ks[3], (out_channels,), jnp.float32, -bound, bound),
    }


if __name__ == "__main__":
    key = jax.random.PRNGKey(0)
    k_x, k_p = jax.random.split(key)

    B, Cin, Cout, HW, ksize = 2, 4, 8, 16, 3
    x = jax.random.normal(k_x, (B, Cin, HW, HW), jnp.float32)    # NCHW
    params = make_params(k_p, Cin, Cout, ksize)

    out = gated_conv_transpose(x, params, ksize=ksize)
    out = jax.block_until_ready(out)

    Ho = Wo = HW + ksize - 1
    assert out.shape == (B, Cout, Ho, Wo), out.shape

    # Strict check: same bf16-rounded matmul operands the kernel uses, f32 math.
    bf16 = lambda a: a.astype(jnp.bfloat16).astype(jnp.float32)
    params_q = dict(params, w_f=bf16(params["w_f"]), w_g=bf16(params["w_g"]))
    ref_strict = _reference(bf16(x), params_q)
    assert jnp.allclose(out, ref_strict, atol=1e-3, rtol=1e-3), "kernel mismatch"

    # Loose check: bf16 matmul operands vs full-f32 reference (cast drift only).
    ref_f32 = _reference(x, params)
    assert jnp.allclose(out, ref_f32, atol=5e-2, rtol=5e-2), "bf16 drift too large"

    print("KERNEL_OK")
</pallas_src>

<mosaic_0001>
module attributes {stable_mosaic.version = 11 : i64} {
  func.func @_gated_convt_kernel(%arg0: i32, %arg1: i32, %arg2: memref<1x36x384xbf16, #tpu.memory_space<vmem>>, %arg3: memref<16x36xbf16, #tpu.memory_space<vmem>>, %arg4: memref<16x1xf32, #tpu.memory_space<vmem>>, %arg5: memref<1x8x384xf32, #tpu.memory_space<vmem>>) attributes {dimension_semantics = [#tpu.dimension_semantics<parallel>, #tpu.dimension_semantics<parallel>], iteration_bounds = array<i64: 2, 1>, scalar_prefetch = 0 : i64, scratch_operands = 0 : i64, tpu.core_type = #tpu.core_type<tc>, window_params = [{transform_indices = @transform_0, window_bounds = array<i64: 1, 36, 384>}, {pipeline_mode = #tpu.pipeline_mode<synchronous>, transform_indices = @transform_1, window_bounds = array<i64: 16, 36>}, {pipeline_mode = #tpu.pipeline_mode<synchronous>, transform_indices = @transform_2, window_bounds = array<i64: 16, 1>}, {transform_indices = @transform_3, window_bounds = array<i64: 1, 8, 384>}]} {
    %c0 = arith.constant 0 : index
    %c0_0 = arith.constant 0 : index
    %0 = vector.load %arg3[%c0, %c0_0] : memref<16x36xbf16, #tpu.memory_space<vmem>>, vector<16x36xbf16>
    %c0_1 = arith.constant 0 : index
    %c0_2 = arith.constant 0 : index
    %c0_3 = arith.constant 0 : index
    %1 = vector.load %arg2[%c0_1, %c0_2, %c0_3] : memref<1x36x384xbf16, #tpu.memory_space<vmem>>, vector<1x36x384xbf16>
    %2 = vector.shape_cast %1 : vector<1x36x384xbf16> to vector<36x384xbf16>
    %cst = arith.constant dense<0.000000e+00> : vector<16x384xf32>
    %3 = tpu.matmul %0, %2, %cst {dimension_numbers = #tpu.dot_dimension_numbers<[1], [0], [0], [1], [0, 0, 1, 1], [], []>} : vector<16x36xbf16>, vector<36x384xbf16>, vector<16x384xf32> -> vector<16x384xf32>
    %c0_4 = arith.constant 0 : index
    %c0_5 = arith.constant 0 : index
    %4 = vector.load %arg4[%c0_4, %c0_5] : memref<16x1xf32, #tpu.memory_space<vmem>>, vector<16x1xf32>
    %5 = vector.broadcast %4 : vector<16x1xf32> to vector<16x384xf32>
    %6 = arith.addf %3, %5 : vector<16x384xf32>
    %7 = vector.extract_strided_slice %6 {offsets = [0, 0], sizes = [8, 384], strides = [1, 1]} : vector<16x384xf32> to vector<8x384xf32>
    %8 = vector.extract_strided_slice %6 {offsets = [8, 0], sizes = [8, 384], strides = [1, 1]} : vector<16x384xf32> to vector<8x384xf32>
    %9 = arith.negf %8 : vector<8x384xf32>
    %10 = math.exp %9 : vector<8x384xf32>
    %cst_6 = arith.constant 1.000000e+00 : f32
    %11 = vector.broadcast %cst_6 : f32 to vector<8x384xf32>
    %12 = arith.addf %11, %10 : vector<8x384xf32>
    %13 = arith.divf %11, %12 : vector<8x384xf32>
    %14 = arith.mulf %7, %13 : vector<8x384xf32>
    %c0_7 = arith.constant 0 : index
    %c0_8 = arith.constant 0 : index
    %c0_9 = arith.constant 0 : index
    %15 = vector.load %arg5[%c0_7, %c0_8, %c0_9] : memref<1x8x384xf32, #tpu.memory_space<vmem>>, vector<1x8x384xf32>
    %16 = vector.shape_cast %15 : vector<1x8x384xf32> to vector<8x384xf32>
    %17 = vector.shape_cast %14 : vector<8x384xf32> to vector<1x8x384xf32>
    tpu.vector_store %arg5[%c0_7, %c0_8, %c0_9], %17 {strides = array<i32>} : memref<1x8x384xf32, #tpu.memory_space<vmem>>, vector<1x8x384xf32>,
    return
  }
  func.func @transform_0(%arg0: i32, %arg1: i32) -> (i32, i32, i32) {
    %c0_i32 = arith.constant 0 : i32
    %c0_i32_0 = arith.constant 0 : i32
    return %arg0, %c0_i32, %arg1 : i32, i32, i32
  }
  func.func @transform_1(%arg0: i32, %arg1: i32) -> (i32, i32) {
    %c0_i32 = arith.constant 0 : i32
    %c0_i32_0 = arith.constant 0 : i32
    %c0_i32_1 = arith.constant 0 : i32
    return %c0_i32, %c0_i32_0 : i32, i32
  }
  func.func @transform_2(%arg0: i32, %arg1: i32) -> (i32, i32) {
    %c0_i32 = arith.constant 0 : i32
    %c0_i32_0 = arith.constant 0 : i32
    %c0_i32_1 = arith.constant 0 : i32
    return %c0_i32, %c0_i32_0 : i32, i32
  }
  func.func @transform_3(%arg0: i32, %arg1: i32) -> (i32, i32, i32) {
    %c0_i32 = arith.constant 0 : i32
    %c0_i32_0 = arith.constant 0 : i32
    return %arg0, %c0_i32, %arg1 : i32, i32, i32
  }
}

</mosaic_0001>

<bundles_post_ra>
// kernel: tpu_custom_call.1
= control target key start
LH: loop header
LB: loop body
LE: loop exit
PB: predicated region body
PF: predicated region fallthrough
CT: control target
= control target key end

     0   :  { %8 = vsyncpa [#allocation3], 0  ;;  %s835_s0 = inlined_call_operand.vmem [shape: bf16[2,36,384], index: 0, kind: input, shape index: {}]   ;;  %s836_s1 = inlined_call_operand.vmem [shape: bf16[16,36], index: 1, kind: input, shape index: {}]   ;;  %s837_s2 = inlined_call_operand.vmem [shape: f32[16,1], index: 2, kind: input, shape index: {}]   ;;  %s838_s3 = inlined_call_operand.hbm [shape: f32[2,8,384], index: 3, kind: output, shape index: {}]  }
   0x1   :  { %10 = vsyncpa [#allocation3 + $0x1], 0  ;;  %s714_s12 = smov 0   ;;  %s716_s13 = smov 0  }
   0x2   :  { %s718_s14 = smov 0   ;;  %s720_s15 = smov 0  }
   0x3   :  { %s722_s16 = smov 0   ;;  %s724_s17 = smov 0  }
   0x4 LB: > { %s485_s18 = sadd.s32 4294967295, %s688_s17   ;;  %s486_s19 = sadd.s32 4294967294, %s688_s17   ;;  %s688_s17 = sphi %s724_s17, %s16_s17   ;;  %s684_s16 = sphi %s722_s16, %s845_s16   ;;  %s680_s15 = sphi %s720_s15, %s844_s15   ;;  %s676_s14 = sphi %s718_s14, %s843_s14   ;;  %s672_s13 = sphi %s716_s13, %s842_s13   ;;  %s668_s12 = sphi %s714_s12, %s841_s12  }
   0x5   : > { %s28_s20 = sadd.s32 1, %s684_s16  ;;  %s107_s21 = sadd.s32 1, %s676_s14 }
   0x6   : > { %p30_p0 = scmp.ge.s32.totalorder %s28_s20, 2  ;;  %p117_p1 = scmp.ne.s32.totalorder %s676_s14, %s672_s13 }
   0x7   : > { %p118_p2 = scmp.eq.s32.totalorder %s485_s18, 1  ;;  %p123_p3 = scmp.ne.s32.totalorder %s672_s13, %s668_s12 }
   0x8   : > { %s847_s20 = smov (%p30_p0, %s28_s20), 0  ;;  %p124_p5 = scmp.eq.s32.totalorder %s486_s19, 1 }
   0x9   : > { %p754_p4 = por %p118_p2, %p117_p1  ;;  %s102_s23 = ssub.s32 %s684_s16, %s847_s20 }
   0xa   : > { %p489_p6 = scmp.ge.s32.totalorder %s688_s17, 1  ;;  %p105_p7 = scmp.eq.s32.totalorder %s102_s23, 0 }
   0xb   : > { %p761_p8 = por %p124_p5, %p123_p3  ;;  %p161_p9 = scmp.lt.s32.totalorder %s688_s17, 3 }
   0xc   : > { %s767_s25 = scalar_select %p105_p7, %s676_s14, %s107_s21  }
   0xd   : > { %p162_p10 = pnand %p489_p6, %p161_p9 }
   0xe   : > { %p190_p11 = scmp.lt.s32.totalorder (!%p162_p10), %s680_s15, 1  ;;  %v690_v0 = vmov (!%p162_p10), 0.0   ;;  %vm691_vm0 = vmmov (!%p162_p10), 0   ;;  %v214_v1 = vld [vmem:[%s837_s2 + $0x8] sm:$0xff] (!%p162_p10)  ;;  %v692_v2 = vmov (!%p162_p10), 0   ;;  %v213_v3 = vld [vmem:[%s837_s2] sm:$0xff] (!%p162_p10) }
   0xf   : > { %165 = sbr.rel (%p162_p10) target bundleno = 299 (0x12b), region = 32  ;;  %514 = vmatprep.subr.bf16.mxu1 (!%p162_p10), %v690_v0  ;;  %520 = vmatprep.mubr.msk.bf16.mxu1 (!%p162_p10), %vm691_vm0, %v690_v0  ;;  %vm274_vm1 = vcmask (!%p162_p10), 1041408   ;;  %v597_v16 = vld [vmem:[%s836_s1] sm:$0xff] (!%p162_p10)   ;;  %vm270_vm2 = vcmask (!%p162_p10), 293888   ;;  %s186_s10 = sand.u32 (!%p162_p10), 1, %s672_s13  }
  0x10   : > { %316 = vmatprep.mubr.bf16.mxu0 (!%p162_p10), %v692_v2  ;;  %585 = vset.pattern.permute.xlu0 (!%p162_p10), %v692_v2  ;;  %s524_s11 = smul.u32 (!%p162_p10), 24, %s186_s10 }
  0x11   : > { %222 = vperm.xlu0 (!%p162_p10), %585, %v214_v1   ;;  %s526_s18 = smul.u32 (!%p162_p10), 384, %s680_s15 }
  0x12   : > { %s188_s19 = scalar_lea.vmem (!%p162_p10), [#allocation2], %s524_s11 }
  0x13   : > { %s409_s21 = sshll.u32 (!%p162_p10), %s188_s19, 4  ;;  %s788_s27 = scalar_lea.hbm (!%p162_p10), %s838_s3, %s526_s18  ;;  %s790_s21 = int_to_ptr.vmem [resolvable:$true] %s409_s21 }
  0x15   : > { %217 = vperm.xlu0 (!%p162_p10), %585, %v213_v3  }
  0x16   : > { %s191_s28 = scalar_select %p190_p11, %s680_s15, 1 }
  0x17   : > { %s393_s15 = scalar_lea.sflag [#allocation3], %s186_s10 }
  0x18   : > { %s525_s29 = smul.u32 60, %s191_s28  ;;  %s610_s28 = scalar_lea.vmem %s790_s21, 384 }
  0x19   : > { %p611_p12 = scmp.ne.s32.totalorder %s790_s21, %s610_s28 }
  0x1a   : > { %s197_s7 = scalar_lea.vmem %s835_s0, %s525_s29  ;;  %s693_s29 = smov [#allocation2]  }
  0x1b   : > { %v586_v4 = vld [vmem:[%s197_s7 + $0x4] ss:$12 sps:$4 sm:$0xff]   ;;  %v588_v5 = vld [vmem:[%s197_s7 + $0x8] ss:$12 sps:$4 sm:$0xff]   ;;  %v589_v6 = vld [vmem:[%s197_s7] ss:$12 sps:$4 sm:$0xff]   ;;  %p612_p13 = pnand %p611_p12, %p754_p4 }
  0x1c   : > { %284 = vmatprep.subr.bf16.mxu0 %v586_v4  ;;  %515 = vmatpush3.bf16.msra.mxu1 %v588_v5  ;;  %v590_v7 = vld [vmem:[%s197_s7 + $0x1c] ss:$12 sps:$4 sm:$0xff]   ;;  %v592_v8 = vld [vmem:[%s197_s7 + $0x20] ss:$12 sps:$4 sm:$0xff]   ;;  %v593_v9 = vld [vmem:[%s197_s7 + $0x18] ss:$12 sps:$4 sm:$0xff]  }
  0x1d   : > { %285 = vmatpush1.bf16.msra.mxu0 %v589_v6  ;;  %516 = vmatprep.subr.bf16.mxu1 %v690_v0  ;;  %v211_v10 = vld [vmem:[%s197_s7 + $0x30] sm:$0x33]  ;;  %v595_v12 = vld [vmem:[%s197_s7 + $0x38] ss:$0 sps:$4 sm:$0x33]   ;;  %p613_p0 = pneg %p612_p13  ;;  %s614_s30 = sshll.u32 %s693_s29, 4  ;;  %s615_s30 = int_to_ptr.vmem [resolvable:$false] %s614_s30 }
  0x1e   : > { %286 = vmatprep.subr.bf16.mxu0 %v590_v7  ;;  %v499_v11 = vcombine.high %v211_v10, %v211_v10  ;;  %v498_v13 = vcombine.low %v211_v10, %v211_v10  ;;  %v282_v14 = vsel %vm274_vm1, %v595_v12, 0  ;;  %s616_s4 = scalar_lea.vmem %s615_s30, 768  ;;  %p617_p1 = scmp.lt.s32.totalorder %s790_s21, %s615_s30 }
  0x1f   : > { %p618_p2 = scmp.lt.s32.totalorder %s616_s4, %s610_s28 }
  0x20   : > { %517 = vmatpush3.bf16.msra.mxu1 %v592_v8  ;;  %v276_v15 = vsel %vm274_vm1, %v498_v13, 0 }
  0x21   : > { %287 = vmatpush1.bf16.msra.mxu0 %v593_v9  ;;  %518 = vmatprep.subr.bf16.mxu1 %v690_v0  ;;  %p619_p3 = por %p618_p2, %p617_p1 }
  0x22   : > { %501 = vmatprep.subr.msk.bf16.mxu0 %vm274_vm1, %v499_v11 }
  0x23   : > { %p620_p5 = pnand %p619_p3, %p613_p0 }
  0x24   : > { %519 = vmatpush3.bf16.msra.mxu1 %v282_v14 }
  0x25   : > { %289 = vmatpush1.bf16.msra.mxu0 %v276_v15 }
  0x27   : > { %521 = vmatmul.mubr.msk.bf16.vlgmr.msra.gmra.mrb[0].mxu1 %vm270_vm2, %v597_v16 }
  0x28   : > { %502 = vmatmul.mubr.msk.bf16.vlgmr.msra.gmra.mrb[0].mxu0 %vm270_vm2, %v597_v16 }
  0x90   : > { %v223_v17 = vpop.permute.xlu0 %222 }
  0x94   : > { %v218_v38 = vpop.permute.xlu0 %217 }
  0xfa   : > { %v361_v18 = vpop.f32.mrb[0].mxu1 }
  0xfb   : > { %v318_v19 = vpop.f32.mrb[0].mxu0  ;;  %v522_v20 = vpop.f32.mrb[1].mxu1  ;;  %v362_v39 = vadd.f32 %v361_v18, %v218_v38 }
  0xfc   : > { %v320_v21 = vpop.f32.mrb[1].mxu0  ;;  %v364_v22 = vpop.f32.mrb[2].mxu1  ;;  %v319_v41 = vadd.f32 %v318_v19, %v218_v38 }
  0xfd   : > { %v365_v23 = vadd.f32 %v364_v22, %v223_v17  ;;  %v322_v24 = vpop.f32.mrb[2].mxu0  ;;  %v523_v25 = vpop.f32.mrb[3].mxu1  ;;  %v321_v43 = vadd.f32 %v320_v21, %v218_v38 }
  0xfe   : > { %v323_v26 = vadd.f32 %v322_v24, %v223_v17  ;;  %v324_v27 = vpop.f32.mrb[3].mxu0 }
  0xff   : > { %v506_v28 = vmul.f32 -1.442695, %v365_v23  ;;  %v325_v29 = vadd.f32 %v324_v27, %v223_v17 }
 0x100   : > { %v504_v30 = vmul.f32 -1.442695, %v323_v26 }
 0x101   : > { %598 = vpow2.f32 %v506_v28  ;;  %v505_v31 = vmul.f32 -1.442695, %v325_v29 }
 0x102   : > { %600 = vpow2.f32 %v504_v30 }
 0x103   : > { %602 = vpow2.f32 %v505_v31 }
 0x10b   : > { %v599_v32 = vpop.eup %598 }
 0x10c   : > { %v601_v33 = vpop.eup %600  ;;  %v379_v34 = vadd.f32 1.0, %v599_v32 }
 0x10d   : > { %v603_v35 = vpop.eup %602  ;;  %v377_v36 = vadd.f32 1.0, %v601_v33 }
 0x10e   : > { %604 = vrcp.f32 %v379_v34  ;;  %v378_v37 = vadd.f32 1.0, %v603_v35 }
 0x10f   : > { %606 = vrcp.f32 %v377_v36 }
 0x110   : > { %608 = vrcp.f32 %v378_v37 }
 0x118   : > { %v605_v40 = vpop.eup %604 }
 0x119   : > { %v607_v42 = vpop.eup %606  ;;  %v388_v44 = vmul.f32 %v605_v40, %v362_v39 }
 0x11a   : > { %v609_v45 = vpop.eup %608  ;;  %v386_v46 = vmul.f32 %v607_v42, %v319_v41 }
 0x11b   : > { %v387_v47 = vmul.f32 %v609_v45, %v321_v43  ;;  %391 = vst [vmem:[%s188_s19 + $0x10] sm:$0xff] %v388_v44 }
 0x11c   : > { %389 = vst [vmem:[%s188_s19] sm:$0xff] %v386_v46 }
 0x11d   : > { %390 = vst [vmem:[%s188_s19 + $0x8] sm:$0xff] %v387_v47 }
 0x11e   : > { %623 = shalt.err (!%p620_p5)
}
 0x11f   : > { %s624_s5 = scalar_lea.hbm %s788_s27, 384  ;;  %s628_s8 = scalar_lea.hbm %s838_s3, 768 }
 0x120   : > { %p625_p6 = scmp.ne.s32.totalorder %s788_s27, %s624_s5  ;;  %p629_p10 = scmp.lt.u32.totalorder %s788_s27, %s838_s3 }
 0x121   : > { %p630_p11 = scmp.lt.u32.totalorder %s628_s8, %s624_s5  ;;  %p632_p13 = scmp.lt.u32.totalorder %s624_s5, %s788_s27 }
 0x122   : > { %p626_p7 = pnand %p625_p6, %p754_p4 }
 0x123   : > { %p631_p12 = por %p630_p11, %p629_p10 }
 0x124   : > { %p627_p9 = pneg %p626_p7 }
 0x125   : > { %p633_p0 = por %p632_p13, %p631_p12 }
 0x127   : > { %p634_p1 = pnand %p633_p0, %p627_p9 }
 0x129   : > { %637 = shalt.err (!%p634_p1)
}
 0x12a   : > { %527 = dma.vmem_to_hbm [thread:$0]  (%p754_p4), %s790_s21, 384, %s788_s27, %s393_s15  }
 0x12b PF: > { %p533_p2 = scmp.ge.s32.totalorder %s688_s17, 2  ;;  %s421_s11 = sand.u32 1, %s668_s12  }
 0x12c   : > { %s422_s18 = scalar_lea.sflag [#allocation3], %s421_s11 }
 0x12d   : > { %p530_p3 = pnand %p533_p2, %p761_p8 }
 0x12f   : > { %663 = dma.done.wait (!%p530_p3), %s422_s18, 384  }
 0x130   : > { %665 = vsyncadd (!%p530_p3), %s422_s18, 4294966912  ;;  %s16_s17 = sadd.s32 1, %s688_s17   ;;  %s841_s12 = smov %s672_s13 }
 0x131   : > { %p13_p5 = scmp.ge.s32.totalorder %s16_s17, 4   ;;  %s842_s13 = smov %s676_s14 }
 0x132   : > { %s843_s14 = smov %s767_s25  ;;  %s844_s15 = smov %s684_s16 }
 0x133   : > { %s845_s16 = smov %s847_s20  ;;  %15 = sbr.rel (!%p13_p5) target bundleno = 4 (0x4), region = 67 }
 0x13a   :  { %427 = vsyncpa [#allocation3], 1 }
 0x13b   :  { %429 = vsyncpa [#allocation3 + $0x1], 1 }

</bundles_post_ra>
